<compile_context>
chip_gen: v5e
topology: v5e:2x2
jax: 0.10.0
libtpu: 0.0.40
codegen_flags: <defaults>
</compile_context>

<pallas_src>
import numpy as np
import jax
import jax.numpy as jnp
from jax.experimental import pallas as pl
from jax.experimental.pallas import tpu as pltpu

# ----------------------------- config -----------------------------
D_NUMERICAL = 4      # number of numerical features F
N_BOUNDS    = 7      # len(feature_representation.get_bounds()) per feature (dim_in)
D_TOKEN     = 32     # d_token
B_TILE      = 128    # batch rows per grid step (keep grid >= 2 so v7x uses both TCs)


# ----------------------------- kernel -----------------------------
def _qe_kernel(x_ref, sel_ref, ta_ref, ma_ref, tb_ref, mb_ref, cb_ref,
               w_ref, b_ref, out_ref):
    F = x_ref.shape[1]
    x = x_ref[...]                                   # (BT, F) f32
    sel = sel_ref[...]                               # (F, K)  0/1 f32

    # Lane-expand x so column c holds x[:, feature_of_column(c)].
    # Exact f32 VPU multiply-adds (sel is 0/1) -> no MXU precision on the compares.
    x_exp = x[:, 0:1] * sel[0:1, :]
    for f in range(1, F):                            # F is tiny and static
        x_exp = x_exp + x[:, f:f + 1] * sel[f:f + 1, :]

    gt_a = (x_exp > ta_ref[...]).astype(jnp.float32)
    gt_b = (x_exp > tb_ref[...]).astype(jnp.float32)
    # One per-lane formula reproduces every feature column exactly:
    #   onehot_j = |padded[j+1] - padded[j]|  (padded = [1, lowerbound, 0], XOR of 0/1)
    #   lowerbound = (x > bound),  ~lowerbound = 1 - (x > bound),  pad columns = 0.
    feats = jnp.abs(ma_ref[...] * gt_a - cb_ref[...] - mb_ref[...] * gt_b)   # (BT, K)

    # Single block-diagonal matmul over all features; CLS is folded into the bias.
    slab = jnp.dot(feats.astype(w_ref.dtype), w_ref[...],
                   preferred_element_type=jnp.float32)                       # (BT, T*D)
    out_ref[...] = slab + b_ref[...]


def _resident(a):
    # constant index_map -> block fetched once, stays VMEM-resident across grid steps
    return pl.BlockSpec(a.shape, lambda i, _nd=a.ndim: (0,) * _nd)


# ----------------------------- wrapper -----------------------------
def quantization_embedding(x, params, *, b_tile=B_TILE):
    B, F = x.shape
    assert B % b_tile == 0, "batch must be a multiple of B_TILE"
    n_out = params['w_big'].shape[1]                 # (F+1) * d_token
    T, D = n_out // D_TOKEN, D_TOKEN

    weights = (params['sel'], params['ta'], params['ma'], params['tb'],
               params['mb'], params['cb'], params['w_big'], params['b_big'])

    out = pl.pallas_call(
        _qe_kernel,
        out_shape=jax.ShapeDtypeStruct((B, n_out), jnp.float32),
        grid=(B // b_tile,),
        in_specs=[pl.BlockSpec((b_tile, F), lambda i: (i, 0))]
                 + [_resident(w) for w in weights],
        out_specs=pl.BlockSpec((b_tile, n_out), lambda i: (i, 0)),
        compiler_params=pltpu.CompilerParams(
            dimension_semantics=("parallel",),       # 2 TCs on v7x; no-op on v5e/v6e
            vmem_limit_bytes=32 * 1024 * 1024),      # well above need, within all chips
    )(x, *weights)
    return out.reshape(B, T, D)                      # contiguous reshape (free)


# ----------------------------- params / folding -----------------------------
def _round_up(v, m):
    return (v + m - 1) // m * m


def init_params(key, *, onehot=True, ordinal=True, ordinal_r=True):
    F, I, D = D_NUMERICAL, N_BOUNDS, D_TOKEN
    Ip1, T = I + 1, F + 1
    k_b, k_c, k_oh, k_or, k_orr = jax.random.split(key, 5)

    # synthetic sorted interval bounds (stand-in for FeatureRepresentation.get_bounds())
    bounds = np.sort(np.asarray(
        jax.random.uniform(k_b, (F, I), minval=-1.0, maxval=1.0)), axis=1).astype(np.float32)

    def bf16_exact(a):
        # round weights to bf16 so bf16 MXU operands are exact (0/1 features x bf16 wts)
        return np.asarray(jnp.asarray(a, jnp.float32).astype(jnp.bfloat16)
                          .astype(jnp.float32))

    cls    = bf16_exact(0.1 * jax.random.normal(k_c,   (D,)))
    w_oh   = bf16_exact(0.1 * jax.random.normal(k_oh,  (F, D, Ip1)))   # nn.Linear (out,in)
    w_ord  = bf16_exact(0.1 * jax.random.normal(k_or,  (F, D, I)))
    w_ordr = bf16_exact(0.1 * jax.random.normal(k_orr, (F, D, I)))

    # ---- lane-aligned column layout, contraction dim padded to a multiple of 128 ----
    oh_off  = 0
    lb_off  = _round_up(F * Ip1, 8)
    lbr_off = lb_off + _round_up(F * I, 8)
    K = _round_up(lbr_off + F * I, 128)

    sel = np.zeros((F, K), np.float32)
    ta  = np.zeros((1, K), np.float32); ma = np.zeros((1, K), np.float32)
    tb  = np.zeros((1, K), np.float32); mb = np.zeros((1, K), np.float32)
    cb  = np.zeros((1, K), np.float32)
    w_big = np.zeros((K, T * D), np.float32)
    b_big = np.zeros((1, T * D), np.float32)
    b_big[0, :D] = cls                                   # CLS token folded into bias

    for f in range(F):
        ocol = slice((1 + f) * D, (2 + f) * D)
        # onehot columns: onehot_j = padded[j+1] ^ padded[j], padded = [1, lb, 0]
        for j in range(Ip1):
            c = oh_off + f * Ip1 + j
            sel[f, c] = 1.0
            ma[0, c] = 1.0
            ta[0, c] = bounds[f, min(j, I - 1)]
            if j == 0:
                cb[0, c] = 1.0                           # padded[0] == 1
            elif j < I:
                mb[0, c] = 1.0
                tb[0, c] = bounds[f, j - 1]
            if onehot:
                w_big[c, ocol] = w_oh[f, :, j]
        # lowerbound / ~lowerbound columns
        for j in range(I):
            c = lb_off + f * I + j
            sel[f, c] = 1.0; ma[0, c] = 1.0; ta[0, c] = bounds[f, j]
            if ordinal:
                w_big[c, ocol] = w_ord[f, :, j]
            c = lbr_off + f * I + j
            sel[f, c] = 1.0; ma[0, c] = 1.0; ta[0, c] = bounds[f, j]; cb[0, c] = 1.0
            if ordinal_r:
                w_big[c, ocol] = w_ordr[f, :, j]

    return dict(
        sel=jnp.asarray(sel), ta=jnp.asarray(ta), ma=jnp.asarray(ma),
        tb=jnp.asarray(tb), mb=jnp.asarray(mb), cb=jnp.asarray(cb),
        w_big=jnp.asarray(w_big, jnp.bfloat16),          # bf16 MXU operands
        b_big=jnp.asarray(b_big),
        raw=dict(bounds=jnp.asarray(bounds), cls=jnp.asarray(cls),
                 w_oh=jnp.asarray(w_oh), w_ord=jnp.asarray(w_ord),
                 w_ordr=jnp.asarray(w_ordr), flags=(onehot, ordinal, ordinal_r)),
    )


# ----------------------------- pure-JAX reference -----------------------------
def reference_forward(x, raw):
    bounds, cls = raw['bounds'], raw['cls']
    w_oh, w_ord, w_ordr = raw['w_oh'], raw['w_ord'], raw['w_ordr']
    use_oh, use_ord, use_ordr = raw['flags']
    B, F = x.shape
    D = cls.shape[0]
    embs = [jnp.broadcast_to(cls[None, None, :], (B, 1, D))]
    for f in range(F):
        lb = x[:, f, None] > bounds[f][None, :]
        ones = jnp.ones((B, 1), bool)
        zeros = jnp.zeros((B, 1), bool)
        padded = jnp.concatenate([ones, lb, zeros], axis=1)
        oh = jnp.logical_xor(padded[:, 1:], padded[:, :-1])
        e = jnp.zeros((B, D), jnp.float32)
        if use_oh:
            e = e + oh.astype(jnp.float32) @ w_oh[f].T
        if use_ord:
            e = e + lb.astype(jnp.float32) @ w_ord[f].T
        if use_ordr:
            e = e + (~lb).astype(jnp.float32) @ w_ordr[f].T
        embs.append(e[:, None, :])
    return jnp.concatenate(embs, axis=1)


# ----------------------------- main -----------------------------
if __name__ == "__main__":
    key = jax.random.PRNGKey(0)
    k_x, k_p = jax.random.split(key)
    B = 2 * B_TILE                                   # grid of 2 -> both v7x cores busy
    x = jax.random.normal(k_x, (B, D_NUMERICAL), dtype=jnp.float32)
    params = init_params(k_p)

    y = quantization_embedding(x, params)
    jax.block_until_ready(y)
    assert y.shape == (B, D_NUMERICAL + 1, D_TOKEN)

    y_ref = reference_forward(x, params['raw'])
    np.testing.assert_allclose(np.asarray(y), np.asarray(y_ref), rtol=1e-4, atol=1e-4)
    print("KERNEL_OK")
</pallas_src>

<mosaic_0001>
module attributes {stable_mosaic.version = 11 : i64} {
  func.func @_qe_kernel(%arg0: i32, %arg1: memref<128x4xf32, #tpu.memory_space<vmem>>, %arg2: memref<4x128xf32, #tpu.memory_space<vmem>>, %arg3: memref<1x128xf32, #tpu.memory_space<vmem>>, %arg4: memref<1x128xf32, #tpu.memory_space<vmem>>, %arg5: memref<1x128xf32, #tpu.memory_space<vmem>>, %arg6: memref<1x128xf32, #tpu.memory_space<vmem>>, %arg7: memref<1x128xf32, #tpu.memory_space<vmem>>, %arg8: memref<128x160xbf16, #tpu.memory_space<vmem>>, %arg9: memref<1x160xf32, #tpu.memory_space<vmem>>, %arg10: memref<128x160xf32, #tpu.memory_space<vmem>>) attributes {dimension_semantics = [#tpu.dimension_semantics<parallel>], iteration_bounds = array<i64: 2>, scalar_prefetch = 0 : i64, scratch_operands = 0 : i64, tpu.core_type = #tpu.core_type<tc>, window_params = [{transform_indices = @transform_0, window_bounds = array<i64: 128, 4>}, {pipeline_mode = #tpu.pipeline_mode<synchronous>, transform_indices = @transform_1, window_bounds = array<i64: 4, 128>}, {pipeline_mode = #tpu.pipeline_mode<synchronous>, transform_indices = @transform_2, window_bounds = array<i64: 1, 128>}, {pipeline_mode = #tpu.pipeline_mode<synchronous>, transform_indices = @transform_3, window_bounds = array<i64: 1, 128>}, {pipeline_mode = #tpu.pipeline_mode<synchronous>, transform_indices = @transform_4, window_bounds = array<i64: 1, 128>}, {pipeline_mode = #tpu.pipeline_mode<synchronous>, transform_indices = @transform_5, window_bounds = array<i64: 1, 128>}, {pipeline_mode = #tpu.pipeline_mode<synchronous>, transform_indices = @transform_6, window_bounds = array<i64: 1, 128>}, {pipeline_mode = #tpu.pipeline_mode<synchronous>, transform_indices = @transform_7, window_bounds = array<i64: 128, 160>}, {pipeline_mode = #tpu.pipeline_mode<synchronous>, transform_indices = @transform_8, window_bounds = array<i64: 1, 160>}, {transform_indices = @transform_9, window_bounds = array<i64: 128, 160>}]} {
    %c0 = arith.constant 0 : index
    %c0_0 = arith.constant 0 : index
    %0 = vector.load %arg1[%c0, %c0_0] : memref<128x4xf32, #tpu.memory_space<vmem>>, vector<128x4xf32>
    %c0_1 = arith.constant 0 : index
    %c0_2 = arith.constant 0 : index
    %1 = vector.load %arg2[%c0_1, %c0_2] : memref<4x128xf32, #tpu.memory_space<vmem>>, vector<4x128xf32>
    %2 = vector.extract_strided_slice %0 {offsets = [0, 0], sizes = [128, 1], strides = [1, 1]} : vector<128x4xf32> to vector<128x1xf32>
    %3 = vector.extract_strided_slice %1 {offsets = [0, 0], sizes = [1, 128], strides = [1, 1]} : vector<4x128xf32> to vector<1x128xf32>
    %4 = vector.broadcast %2 : vector<128x1xf32> to vector<128x128xf32>
    %5 = vector.broadcast %3 : vector<1x128xf32> to vector<128x128xf32>
    %6 = arith.mulf %4, %5 : vector<128x128xf32>
    %7 = vector.extract_strided_slice %0 {offsets = [0, 1], sizes = [128, 1], strides = [1, 1]} : vector<128x4xf32> to vector<128x1xf32>
    %8 = vector.extract_strided_slice %1 {offsets = [1, 0], sizes = [1, 128], strides = [1, 1]} : vector<4x128xf32> to vector<1x128xf32>
    %9 = vector.broadcast %7 : vector<128x1xf32> to vector<128x128xf32>
    %10 = vector.broadcast %8 : vector<1x128xf32> to vector<128x128xf32>
    %11 = arith.mulf %9, %10 : vector<128x128xf32>
    %12 = arith.addf %6, %11 : vector<128x128xf32>
    %13 = vector.extract_strided_slice %0 {offsets = [0, 2], sizes = [128, 1], strides = [1, 1]} : vector<128x4xf32> to vector<128x1xf32>
    %14 = vector.extract_strided_slice %1 {offsets = [2, 0], sizes = [1, 128], strides = [1, 1]} : vector<4x128xf32> to vector<1x128xf32>
    %15 = vector.broadcast %13 : vector<128x1xf32> to vector<128x128xf32>
    %16 = vector.broadcast %14 : vector<1x128xf32> to vector<128x128xf32>
    %17 = arith.mulf %15, %16 : vector<128x128xf32>
    %18 = arith.addf %12, %17 : vector<128x128xf32>
    %19 = vector.extract_strided_slice %0 {offsets = [0, 3], sizes = [128, 1], strides = [1, 1]} : vector<128x4xf32> to vector<128x1xf32>
    %20 = vector.extract_strided_slice %1 {offsets = [3, 0], sizes = [1, 128], strides = [1, 1]} : vector<4x128xf32> to vector<1x128xf32>
    %21 = vector.broadcast %19 : vector<128x1xf32> to vector<128x128xf32>
    %22 = vector.broadcast %20 : vector<1x128xf32> to vector<128x128xf32>
    %23 = arith.mulf %21, %22 : vector<128x128xf32>
    %24 = arith.addf %18, %23 : vector<128x128xf32>
    %c0_3 = arith.constant 0 : index
    %c0_4 = arith.constant 0 : index
    %25 = vector.load %arg3[%c0_3, %c0_4] : memref<1x128xf32, #tpu.memory_space<vmem>>, vector<1x128xf32>
    %26 = vector.broadcast %25 : vector<1x128xf32> to vector<128x128xf32>
    %27 = arith.cmpf ogt, %24, %26 : vector<128x128xf32>
    %28 = arith.extui %27 : vector<128x128xi1> to vector<128x128xi32>
    %29 = arith.sitofp %28 : vector<128x128xi32> to vector<128x128xf32>
    %c0_5 = arith.constant 0 : index
    %c0_6 = arith.constant 0 : index
    %30 = vector.load %arg5[%c0_5, %c0_6] : memref<1x128xf32, #tpu.memory_space<vmem>>, vector<1x128xf32>
    %31 = vector.broadcast %30 : vector<1x128xf32> to vector<128x128xf32>
    %32 = arith.cmpf ogt, %24, %31 : vector<128x128xf32>
    %33 = arith.extui %32 : vector<128x128xi1> to vector<128x128xi32>
    %34 = arith.sitofp %33 : vector<128x128xi32> to vector<128x128xf32>
    %c0_7 = arith.constant 0 : index
    %c0_8 = arith.constant 0 : index
    %35 = vector.load %arg4[%c0_7, %c0_8] : memref<1x128xf32, #tpu.memory_space<vmem>>, vector<1x128xf32>
    %36 = vector.broadcast %35 : vector<1x128xf32> to vector<128x128xf32>
    %37 = arith.mulf %36, %29 : vector<128x128xf32>
    %c0_9 = arith.constant 0 : index
    %c0_10 = arith.constant 0 : index
    %38 = vector.load %arg7[%c0_9, %c0_10] : memref<1x128xf32, #tpu.memory_space<vmem>>, vector<1x128xf32>
    %39 = vector.broadcast %38 : vector<1x128xf32> to vector<128x128xf32>
    %40 = arith.subf %37, %39 : vector<128x128xf32>
    %c0_11 = arith.constant 0 : index
    %c0_12 = arith.constant 0 : index
    %41 = vector.load %arg6[%c0_11, %c0_12] : memref<1x128xf32, #tpu.memory_space<vmem>>, vector<1x128xf32>
    %42 = vector.broadcast %41 : vector<1x128xf32> to vector<128x128xf32>
    %43 = arith.mulf %42, %34 : vector<128x128xf32>
    %44 = arith.subf %40, %43 : vector<128x128xf32>
    %45 = math.absf %44 : vector<128x128xf32>
    %46 = arith.truncf %45 : vector<128x128xf32> to vector<128x128xbf16>
    %c0_13 = arith.constant 0 : index
    %c0_14 = arith.constant 0 : index
    %47 = vector.load %arg8[%c0_13, %c0_14] : memref<128x160xbf16, #tpu.memory_space<vmem>>, vector<128x160xbf16>
    %cst = arith.constant dense<0.000000e+00> : vector<128x160xf32>
    %48 = tpu.matmul %46, %47, %cst {dimension_numbers = #tpu.dot_dimension_numbers<[1], [0], [0], [1], [0, 0, 1, 1], [], []>} : vector<128x128xbf16>, vector<128x160xbf16>, vector<128x160xf32> -> vector<128x160xf32>
    %c0_15 = arith.constant 0 : index
    %c0_16 = arith.constant 0 : index
    %49 = vector.load %arg9[%c0_15, %c0_16] : memref<1x160xf32, #tpu.memory_space<vmem>>, vector<1x160xf32>
    %50 = vector.broadcast %49 : vector<1x160xf32> to vector<128x160xf32>
    %51 = arith.addf %48, %50 : vector<128x160xf32>
    %c0_17 = arith.constant 0 : index
    %c0_18 = arith.constant 0 : index
    %52 = vector.load %arg10[%c0_17, %c0_18] : memref<128x160xf32, #tpu.memory_space<vmem>>, vector<128x160xf32>
    tpu.vector_store %arg10[%c0_17, %c0_18], %51 {strides = array<i32>} : memref<128x160xf32, #tpu.memory_space<vmem>>, vector<128x160xf32>,
    return
  }
  func.func @transform_0(%arg0: i32) -> (i32, i32) {
    %c0_i32 = arith.constant 0 : i32
    %c0_i32_0 = arith.constant 0 : i32
    return %arg0, %c0_i32 : i32, i32
  }
  func.func @transform_1(%arg0: i32) -> (i32, i32) {
    %c0_i32 = arith.constant 0 : i32
    %c0_i32_0 = arith.constant 0 : i32
    %c0_i32_1 = arith.constant 0 : i32
    return %c0_i32, %c0_i32_0 : i32, i32
  }
  func.func @transform_2(%arg0: i32) -> (i32, i32) {
    %c0_i32 = arith.constant 0 : i32
    %c0_i32_0 = arith.constant 0 : i32
    %c0_i32_1 = arith.constant 0 : i32
    return %c0_i32, %c0_i32_0 : i32, i32
  }
  func.func @transform_3(%arg0: i32) -> (i32, i32) {
    %c0_i32 = arith.constant 0 : i32
    %c0_i32_0 = arith.constant 0 : i32
    %c0_i32_1 = arith.constant 0 : i32
    return %c0_i32, %c0_i32_0 : i32, i32
  }
  func.func @transform_4(%arg0: i32) -> (i32, i32) {
    %c0_i32 = arith.constant 0 : i32
    %c0_i32_0 = arith.constant 0 : i32
    %c0_i32_1 = arith.constant 0 : i32
    return %c0_i32, %c0_i32_0 : i32, i32
  }
  func.func @transform_5(%arg0: i32) -> (i32, i32) {
    %c0_i32 = arith.constant 0 : i32
    %c0_i32_0 = arith.constant 0 : i32
    %c0_i32_1 = arith.constant 0 : i32
    return %c0_i32, %c0_i32_0 : i32, i32
  }
  func.func @transform_6(%arg0: i32) -> (i32, i32) {
    %c0_i32 = arith.constant 0 : i32
    %c0_i32_0 = arith.constant 0 : i32
    %c0_i32_1 = arith.constant 0 : i32
    return %c0_i32, %c0_i32_0 : i32, i32
  }
  func.func @transform_7(%arg0: i32) -> (i32, i32) {
    %c0_i32 = arith.constant 0 : i32
    %c0_i32_0 = arith.constant 0 : i32
    %c0_i32_1 = arith.constant 0 : i32
    return %c0_i32, %c0_i32_0 : i32, i32
  }
  func.func @transform_8(%arg0: i32) -> (i32, i32) {
    %c0_i32 = arith.constant 0 : i32
    %c0_i32_0 = arith.constant 0 : i32
    %c0_i32_1 = arith.constant 0 : i32
    return %c0_i32, %c0_i32_0 : i32, i32
  }
  func.func @transform_9(%arg0: i32) -> (i32, i32) {
    %c0_i32 = arith.constant 0 : i32
    %c0_i32_0 = arith.constant 0 : i32
    return %arg0, %c0_i32 : i32, i32
  }
}

</mosaic_0001>

<bundles_post_ra>
// kernel: tpu_custom_call.1
= control target key start
LH: loop header
LB: loop body
LE: loop exit
PB: predicated region body
PF: predicated region fallthrough
CT: control target
= control target key end

     0   :  { %s1502_s30 = smov 0   ;;  %s2112_s0 = inlined_call_operand.vmem [shape: f32[256,4], index: 0, kind: input, shape index: {}]   ;;  %s2113_s1 = inlined_call_operand.vmem [shape: f32[4,128], index: 1, kind: input, shape index: {}]   ;;  %s2114_s2 = inlined_call_operand.vmem [shape: f32[1,128], index: 2, kind: input, shape index: {}]   ;;  %s2115_s3 = inlined_call_operand.vmem [shape: f32[1,128], index: 3, kind: input, shape index: {}]   ;;  %s2116_s4 = inlined_call_operand.vmem [shape: f32[1,128], index: 4, kind: input, shape index: {}]   ;;  %s2117_s5 = inlined_call_operand.vmem [shape: f32[1,128], index: 5, kind: input, shape index: {}]   ;;  %s2118_s6 = inlined_call_operand.vmem [shape: f32[1,128], index: 6, kind: input, shape index: {}]   ;;  %s2119_s7 = inlined_call_operand.vmem [shape: bf16[128,160], index: 7, kind: input, shape index: {}]   ;;  %s2120_s8 = inlined_call_operand.vmem [shape: f32[1,160], index: 8, kind: input, shape index: {}]   ;;  %s2121_s9 = inlined_call_operand.vmem [shape: f32[256,160], index: 9, kind: output, shape index: {}]  }
   0x1 LB: > { %s1238_s10 = sadd.s32 4294967295, %s1445_s30   ;;  %p1242_p0 = scmp.ge.s32.totalorder %s1445_s30, 1  ;;  %s1445_s30 = sphi %s1502_s30, %s19_s30  }
   0x2   : > { %p288_p1 = scmp.lt.s32.totalorder %s1445_s30, 3 }
   0x4   : > { %p289_p2 = pnand %p1242_p0, %p288_p1 }
   0x5   : > { %s1243_s11 = sshll.u32 (!%p289_p2), %s1238_s10, 4 }
   0x6   : > { %292 = sbr.rel (%p289_p2) target bundleno = 485 (0x1e5), region = 56  ;;  %p326_p3 = scmp.lt.s32.totalorder (!%p289_p2), %s1243_s11, 31 }
   0xb   : > { %v1447_v0 = vmov 0   ;;  %s2123_s11 = smov (!%p326_p3, %s1243_s11), 31  ;;  %v1448_v17 = vmov 1   ;;  %v1449_v18 = vmov 2   ;;  %v1450_v19 = vmov 3  }
   0xc   : > { %1394 = vset.pattern.permute.xlu2 %v1447_v0  ;;  %1393 = vset.pattern.permute.xlu1 %v1447_v0  ;;  %s1244_s12 = sshll.u32 %s2123_s11, 3  ;;  %v1623_v32 = vld [vmem:[%s2113_s1] sm:$0xf]  ;;  %v1338_v41 = vld [vmem:[%s2119_s7 + $0x70] sm:$0xf]  ;;  %s1346_s18 = sshll.u32 %s2123_s11, 4 }
   0xd   : > { %1392 = vset.pattern.permute.xlu0 %v1447_v0  ;;  %s1516_s15 = scalar_lea.vmem %s2112_s0, %s1244_s12  ;;  %v1626_v33 = vperm.slane %v1623_v32, 0  ;;  %v1629_v34 = vperm.slane %v1623_v32, 1  ;;  %v1362_v42 = vld [vmem:[%s2119_s7 + $0x74] sm:$0xf0]  ;;  %v1361_v43 = vld [vmem:[%s2119_s7 + $0x74] sm:$0xf]  ;;  %s2027_s21 = scalar_lea.vmem %s2121_s9, %s1346_s18 }
   0xe   : > { %v1519_v1 = vld [vmem:[%s1516_s15 + $0x20] sm:$0xff]  ;;  %v1522_v2 = vld [vmem:[%s1516_s15 + $0x10] sm:$0xff]  ;;  %v1528_v4 = vld [vmem:[%s1516_s15 + $0x28] sm:$0xff]  ;;  %v1339_v44 = vor.u32 %v1362_v42, %v1338_v41 }
   0xf   : > { %v338_v3 = vld [vmem:[%s1516_s15] sm:$0xff]  ;;  %377 = vperm.xlu2 %1394, %v1519_v1   ;;  %367 = vperm.xlu1 %1393, %v1522_v2   ;;  %v1531_v5 = vld [vmem:[%s1516_s15 + $0x18] sm:$0xff]  ;;  %v339_v6 = vld [vmem:[%s1516_s15 + $0x8] sm:$0xff] }
  0x10   : > { %357 = vperm.xlu0 %1392, %v338_v3   ;;  %v346_v7 = vld [vmem:[%s1516_s15 + $0x40] sm:$0xff]  ;;  %v1538_v8 = vld [vmem:[%s1516_s15 + $0x38] sm:$0xff]  ;;  %v1541_v9 = vld [vmem:[%s1516_s15 + $0x30] sm:$0xff]  ;;  %1363 = vmatpush.bf16.msra.mxu2 %v1339_v44 }
  0x11   : > { %v349_v10 = vld [vmem:[%s1516_s15 + $0x58] sm:$0xff]  ;;  %v348_v11 = vld [vmem:[%s1516_s15 + $0x50] sm:$0xff]  ;;  %v347_v12 = vld [vmem:[%s1516_s15 + $0x48] sm:$0xff]  ;;  %1049 = vmatpush.bf16.msra.mxu0 %v1339_v44 }
  0x12   : > { %v1549_v13 = vld [vmem:[%s1516_s15 + $0x70] sm:$0xff]  ;;  %v1552_v14 = vld [vmem:[%s1516_s15 + $0x68] sm:$0xff]  ;;  %v1555_v15 = vld [vmem:[%s1516_s15 + $0x60] sm:$0xff] }
  0x13   : > { %v1561_v16 = vld [vmem:[%s1516_s15 + $0x78] sm:$0xff]  ;;  %v1330_v52 = vld [vmem:[%s2119_s7 + $0x60] sm:$0xf]  ;;  %v1360_v53 = vld [vmem:[%s2119_s7 + $0x64] sm:$0xf0] }
  0x14   : > { %v1340_v45 = vld [vmem:[%s2119_s7 + $0x78] sm:$0xf0]  ;;  %v1359_v54 = vld [vmem:[%s2119_s7 + $0x64] sm:$0xf]  ;;  %v1331_v55 = vor.u32 %v1360_v53, %v1330_v52  ;;  %v1332_v56 = vld [vmem:[%s2119_s7 + $0x68] sm:$0xf0] }
  0x15   : > { %v1343_v48 = vor.u32 %v1361_v43, %v1340_v45  ;;  %v1335_v58 = vor.u32 %v1359_v54, %v1332_v56  ;;  %v1322_v59 = vld [vmem:[%s2119_s7 + $0x50] sm:$0xf]  ;;  %v1358_v60 = vld [vmem:[%s2119_s7 + $0x54] sm:$0xf0]  ;;  %v1357_v61 = vld [vmem:[%s2119_s7 + $0x54] sm:$0xf] }
  0x16   : > { %1364 = vmatpush.bf16.msra.mxu2 %v1331_v55  ;;  %v1323_v62 = vor.u32 %v1358_v60, %v1322_v59  ;;  %v1324_v63 = vld [vmem:[%s2119_s7 + $0x58] sm:$0xf0]  ;;  %1050 = vmatpush.bf16.msra.mxu0 %v1331_v55  ;;  %v1298_v43 = vld [vmem:[%s2119_s7 + $0x20] sm:$0xf]  ;;  %v1352_v44 = vld [vmem:[%s2119_s7 + $0x24] sm:$0xf0] }
  0x17   : > { %382 = vperm.xlu2 %1394, %v1528_v4   ;;  %372 = vperm.xlu1 %1393, %v1531_v5   ;;  %v1327_v0 = vor.u32 %v1357_v61, %v1324_v63  ;;  %v1351_v45 = vld [vmem:[%s2119_s7 + $0x24] sm:$0xf]  ;;  %v1290_v54 = vld [vmem:[%s2119_s7 + $0x10] sm:$0xf]  ;;  %v1349_v55 = vld [vmem:[%s2119_s7 + $0x14] sm:$0xf] }
  0x18   : > { %362 = vperm.xlu0 %1392, %v339_v6   ;;  %1371 = vmatpush.bf16.msra.mxu3 %v1343_v48  ;;  %v1292_v56 = vld [vmem:[%s2119_s7 + $0x18] sm:$0xf0]  ;;  %v1282_v61 = vld [vmem:[%s2119_s7] sm:$0xf] }
  0x19   : > { %1098 = vmatpush.bf16.msra.mxu1 %v1343_v48  ;;  %v1295_v60 = vor.u32 %v1349_v55, %v1292_v56  ;;  %v1843_v56 = vld [vmem:[%s2117_s5] ss:$0 sm:$0xff] }
  0x1a   : > { %1365 = vmatpush.bf16.msra.mxu2 %v1323_v62  ;;  %1051 = vmatpush.bf16.msra.mxu0 %v1323_v62  ;;  %v1348_v62 = vld [vmem:[%s2119_s7 + $0x4] sm:$0xf0] }
  0x1c   : > { %1372 = vmatpush.bf16.msra.mxu3 %v1335_v58 }
  0x1d   : > { %1099 = vmatpush.bf16.msra.mxu1 %v1335_v58 }
  0x1f   : > { %397 = vperm.xlu2 %1394, %v346_v7   ;;  %392 = vperm.xlu1 %1393, %v1538_v8  }
  0x20   : > { %387 = vperm.xlu0 %1392, %v1541_v9   ;;  %1373 = vmatpush.bf16.msra.mxu3 %v1327_v0 }
  0x21   : > { %1100 = vmatpush.bf16.msra.mxu1 %v1327_v0 }
  0x27   : > { %412 = vperm.xlu2 %1394, %v349_v10   ;;  %407 = vperm.xlu1 %1393, %v348_v11  }
  0x28   : > { %402 = vperm.xlu0 %1392, %v347_v12  }
  0x2f   : > { %427 = vperm.xlu2 %1394, %v1549_v13   ;;  %422 = vperm.xlu1 %1393, %v1552_v14  }
  0x30   : > { %417 = vperm.xlu0 %1392, %v1555_v15  }
  0x37   : > { %1396 = vset.pattern.permute.xlu2 %v1448_v17  ;;  %1395 = vset.pattern.permute.xlu1 %v1448_v17 }
  0x38   : > { %432 = vperm.xlu0 %1392, %v1561_v16   ;;  %457 = vperm.xlu2 %1396, %v339_v6  }
  0x39   : > { %453 = vperm.xlu1 %1395, %v338_v3  }
  0x40   : > { %1397 = vset.pattern.permute.xlu0 %v1448_v17  ;;  %469 = vperm.xlu2 %1396, %v1519_v1  }
  0x41   : > { %465 = vperm.xlu1 %1395, %v1531_v5   ;;  %461 = vperm.xlu0 %1397, %v1522_v2  }
  0x48   : > { %477 = vperm.xlu2 %1396, %v1541_v9  }
  0x49   : > { %473 = vperm.xlu1 %1395, %v1528_v4   ;;  %485 = vperm.xlu0 %1397, %v346_v7  }
  0x50   : > { %1398 = vset.pattern.permute.xlu2 %v1449_v18 }
  0x51   : > { %489 = vperm.xlu1 %1395, %v347_v12   ;;  %1403 = vset.pattern.permute.xlu0 %v1450_v19 }
  0x52   : > { %582 = vperm.xlu2 %1398, %v346_v7   ;;  %647 = vperm.xlu0 %1403, %v338_v3  }
  0x59   : > { %1399 = vset.pattern.permute.xlu1 %v1450_v19 }
  0x5a   : > { %1400 = vset.pattern.permute.xlu2 %v1450_v19  ;;  %679 = vperm.xlu1 %1399, %v346_v7  }
  0x5b   : > { %1404 = vset.pattern.permute.xlu0 %v1449_v18  ;;  %683 = vperm.xlu2 %1400, %v347_v12  }
  0x5c   : > { %586 = vperm.xlu0 %1404, %v347_v12   ;;  %v1306_v12 = vld [vmem:[%s2119_s7 + $0x30] sm:$0xf] }
  0x62   : > { %1401 = vset.pattern.permute.xlu1 %v1449_v18 }
  0x63   : > { %1402 = vset.pattern.permute.xlu2 %v1449_v18  ;;  %550 = vperm.xlu1 %1401, %v338_v3  }
  0x64   : > { %554 = vperm.xlu2 %1402, %v339_v6   ;;  %594 = vperm.xlu0 %1404, %v349_v10  }
  0x69   : > { %v378_v20 = vpop.permute.xlu2 %377 }
  0x6a   : > { %v440_v38 = vmul.f32 %v1626_v33, %v378_v20  ;;  %v1308_v20 = vld [vmem:[%s2119_s7 + $0x38] sm:$0xf0] }
  0x6b   : > { %1405 = vset.pattern.permute.xlu1 %v1450_v19 }
  0x6c   : > { %1406 = vset.pattern.permute.xlu2 %v1448_v17  ;;  %651 = vperm.xlu1 %1405, %v339_v6   ;;  %v1356_v6 = vld [vmem:[%s2119_s7 + $0x44] sm:$0xf0] }
  0x6d   : > { %493 = vperm.xlu2 %1406, %v348_v11   ;;  %602 = vperm.xlu0 %1404, %v1552_v14  }
  0x71   : > { %v1582_v21 = vpop.permute.xlu2 %382 }
  0x72   : > { %v441_v63 = vmul.f32 %v1626_v33, %v1582_v21  ;;  %v1283_v21 = vor.u32 %v1348_v62, %v1282_v61 }
  0x74   : > { %1407 = vset.pattern.permute.xlu1 %v1448_v17 }
  0x75   : > { %1408 = vset.pattern.permute.xlu2 %v1449_v18  ;;  %497 = vperm.xlu1 %1407, %v349_v10  }
  0x76   : > { %590 = vperm.xlu2 %1408, %v348_v11   ;;  %1417 = vset.pattern.permute.xlu0 %v1450_v19 }
  0x77   : > { %655 = vperm.xlu0 %1417, %v1522_v2  }
  0x79   : > { %v1588_v22 = vpop.permute.xlu2 %397 }
  0x7d   : > { %1409 = vset.pattern.permute.xlu1 %v1450_v19 }
  0x7e   : > { %1410 = vset.pattern.permute.xlu2 %v1450_v19  ;;  %687 = vperm.xlu1 %1409, %v348_v11  }
  0x7f   : > { %691 = vperm.xlu2 %1410, %v349_v10   ;;  %663 = vperm.xlu0 %1417, %v1519_v1   ;;  %v1355_v10 = vld [vmem:[%s2119_s7 + $0x44] sm:$0xf] }
  0x81   : > { %v1593_v23 = vpop.permute.xlu2 %412  ;;  %v1595_v24 = vpop.permute.xlu1 %367 }
  0x82   : > { %v1597_v25 = vpop.permute.xlu0 %357 }
  0x86   : > { %1411 = vset.pattern.permute.xlu1 %v1449_v18 }
  0x87   : > { %1412 = vset.pattern.permute.xlu2 %v1449_v18  ;;  %558 = vperm.xlu1 %1411, %v1522_v2  }
  0x88   : > { %562 = vperm.xlu2 %1412, %v1531_v5   ;;  %1426 = vset.pattern.permute.xlu0 %v1449_v18 }
  0x89   : > { %v1604_v26 = vpop.permute.xlu2 %427  ;;  %v1606_v27 = vpop.permute.xlu1 %372  ;;  %610 = vperm.xlu0 %1426, %v1561_v16  }
  0x8a   : > { %v1609_v28 = vpop.permute.xlu0 %362 }
  0x8f   : > { %1413 = vset.pattern.permute.xlu1 %v1450_v19 }
  0x90   : > { %1414 = vset.pattern.permute.xlu2 %v1448_v17  ;;  %659 = vperm.xlu1 %1413, %v1531_v5   ;;  %v1314_v5 = vld [vmem:[%s2119_s7 + $0x40] sm:$0xf] }
  0x91   : > { %501 = vperm.xlu2 %1414, %v1555_v15   ;;  %v1615_v29 = vpop.permute.xlu1 %392  ;;  %578 = vperm.xlu0 %1426, %v1538_v8   ;;  %v1315_v7 = vor.u32 %v1356_v6, %v1314_v5  ;;  %v1347_v6 = vld [vmem:[%s2119_s7 + $0x4] sm:$0xf] }
  0x92   : > { %v1618_v30 = vpop.permute.xlu2 %457  ;;  %v388_v31 = vpop.permute.xlu0 %387 }
  0x93   : > { %v442_v46 = vmul.f32 %v1626_v33, %v388_v31  ;;  %1366 = vmatpush.bf16.msra.mxu2 %v1315_v7  ;;  %1052 = vmatpush.bf16.msra.mxu0 %v1315_v7  ;;  %v1284_v7 = vld [vmem:[%s2119_s7 + $0x8] sm:$0xf0] }
  0x98   : > { %1415 = vset.pattern.permute.xlu1 %v1448_v17 }
  0x99   : > { %1416 = vset.pattern.permute.xlu2 %v1449_v18  ;;  %505 = vperm.xlu1 %1415, %v1552_v14   ;;  %v1634_v35 = vpop.permute.xlu1 %407 }
  0x9a   : > { %598 = vperm.xlu2 %1416, %v1555_v15   ;;  %v470_v36 = vpop.permute.xlu2 %469  ;;  %v1637_v37 = vpop.permute.xlu0 %402  ;;  %1433 = vset.pattern.permute.xlu0 %v1450_v19 }
  0x9b   : > { %v521_v39 = vmul.f32 %v1629_v34, %v470_v36 }
  0x9d   : > { %v1642_v40 = vadd.f32 %v521_v39, %v440_v38  ;;  %v438_v39 = vmul.f32 %v1626_v33, %v1595_v24 }
  0xa1   : > { %1418 = vset.pattern.permute.xlu1 %v1450_v19  ;;  %v1658_v47 = vpop.permute.xlu1 %422 }
  0xa2   : > { %1419 = vset.pattern.permute.xlu2 %v1450_v19  ;;  %695 = vperm.xlu1 %1418, %v1555_v15   ;;  %v1662_v49 = vpop.permute.xlu0 %417  ;;  %v478_v50 = vpop.permute.xlu2 %477  ;;  %v1353_v15 = vld [vmem:[%s2119_s7 + $0x34] sm:$0xf] }
  0xa3   : > { %699 = vperm.xlu2 %1419, %v1552_v14   ;;  %v523_v51 = vmul.f32 %v1629_v34, %v478_v50  ;;  %v1354_v14 = vld [vmem:[%s2119_s7 + $0x34] sm:$0xf0]  ;;  %v1311_v38 = vor.u32 %v1353_v15, %v1308_v20  ;;  %v1300_v50 = vld [vmem:[%s2119_s7 + $0x28] sm:$0xf0]  ;;  %v1786_v15 = vperm.slane %v1623_v32, 2 }
  0xa4   : > { %v1307_v31 = vor.u32 %v1354_v14, %v1306_v12 }
  0xa5   : > { %v1678_v57 = vadd.f32 %v523_v51, %v442_v46  ;;  %v439_v46 = vmul.f32 %v1626_v33, %v1606_v27  ;;  %v1299_v51 = vor.u32 %v1352_v44, %v1298_v43  ;;  %v1303_v27 = vor.u32 %v1351_v45, %v1300_v50 }
  0xa6   : > { %1367 = vmatpush.bf16.msra.mxu2 %v1307_v31  ;;  %1053 = vmatpush.bf16.msra.mxu0 %v1307_v31  ;;  %v444_v31 = vmul.f32 %v1626_v33, %v1588_v22  ;;  %v445_v43 = vmul.f32 %v1626_v33, %v1637_v37  ;;  %v436_v50 = vmul.f32 %v1626_v33, %v1597_v25  ;;  %v1451_v25 = vmov 0.0  }
  0xaa   : > { %1420 = vset.pattern.permute.xlu1 %v1449_v18  ;;  %v1693_v2 = vpop.permute.xlu0 %432  ;;  %1368 = vmatpush.bf16.msra.mxu2 %v1299_v51 }
  0xab   : > { %1421 = vset.pattern.permute.xlu2 %v1449_v18  ;;  %566 = vperm.xlu1 %1420, %v1519_v1   ;;  %v1697_v3 = vpop.permute.xlu1 %453  ;;  %v1316_v1 = vld [vmem:[%s2119_s7 + $0x48] sm:$0xf0] }
  0xac   : > { %570 = vperm.xlu2 %1421, %v1528_v4   ;;  %v1319_v11 = vor.u32 %v1355_v10, %v1316_v1  ;;  %v1724_v36 = vpop.permute.xlu2 %582  ;;  %1054 = vmatpush.bf16.msra.mxu0 %v1299_v51  ;;  %v517_v51 = vmul.f32 %v1629_v34, %v1697_v3 }
  0xae   : > { %1374 = vmatpush.bf16.msra.mxu3 %v1319_v11  ;;  %1101 = vmatpush.bf16.msra.mxu1 %v1319_v11  ;;  %v1287_v11 = vor.u32 %v1347_v6, %v1284_v7 }
  0xb2   : > { %1375 = vmatpush.bf16.msra.mxu3 %v1311_v38  ;;  %1102 = vmatpush.bf16.msra.mxu1 %v1311_v38 }
  0xb3   : > { %1422 = vset.pattern.permute.xlu1 %v1450_v19  ;;  %v466_v41 = vpop.permute.xlu1 %465  ;;  %v462_v42 = vpop.permute.xlu0 %461 }
  0xb4   : > { %v520_v24 = vmul.f32 %v1629_v34, %v466_v41  ;;  %v519_v48 = vmul.f32 %v1629_v34, %v462_v42  ;;  %1423 = vset.pattern.permute.xlu2 %v1448_v17  ;;  %667 = vperm.xlu1 %1422, %v1528_v4   ;;  %v1350_v4 = vld [vmem:[%s2119_s7 + $0x14] sm:$0xf0]  ;;  %v1798_v41 = vperm.slane %v1623_v32, 3 }
  0xb5   : > { %509 = vperm.xlu2 %1423, %v1549_v13   ;;  %v1291_v58 = vor.u32 %v1350_v4, %v1290_v54  ;;  %v684_v10 = vpop.permute.xlu2 %683 }
  0xb6   : > { %v1748_v52 = vadd.f32 %v520_v24, %v439_v46  ;;  %v1750_v53 = vadd.f32 %v519_v48, %v438_v39  ;;  %1376 = vmatpush.bf16.msra.mxu3 %v1303_v27  ;;  %1103 = vmatpush.bf16.msra.mxu1 %v1303_v27  ;;  %v622_v39 = vmul.f32 %v1786_v15, %v1724_v36  ;;  %v1818_v46 = vld [vmem:[%s2115_s3] ss:$0 sm:$0xff] }
  0xb7   : > { %1369 = vmatpush.bf16.msra.mxu2 %v1291_v58  ;;  %1055 = vmatpush.bf16.msra.mxu0 %v1291_v58 }
  0xba   : > { %1377 = vmatpush.bf16.msra.mxu3 %v1295_v60  ;;  %1104 = vmatpush.bf16.msra.mxu1 %v1295_v60 }
  0xbb   : > { %v474_v59 = vpop.permute.xlu1 %473  ;;  %v486_v5 = vpop.permute.xlu0 %485  ;;  %1370 = vmatpush.bf16.msra.mxu2 %v1283_v21  ;;  %1056 = vmatpush.bf16.msra.mxu0 %v1283_v21  ;;  %v518_v21 = vmul.f32 %v1629_v34, %v1618_v30 }
  0xbc   : > { %v522_v0 = vmul.f32 %v1629_v34, %v474_v59  ;;  %1424 = vset.pattern.permute.xlu1 %v1448_v17  ;;  %v525_v20 = vmul.f32 %v1629_v34, %v486_v5  ;;  %v533_v59 = vadd.f32 %v517_v51, %v436_v50 }
  0xbd   : > { %1425 = vset.pattern.permute.xlu2 %v1449_v18  ;;  %513 = vperm.xlu1 %1424, %v1561_v16  }
  0xbe   : > { %v1782_v1 = vadd.f32 %v522_v0, %v441_v63  ;;  %606 = vperm.xlu2 %1425, %v1549_v13   ;;  %1378 = vmatpush.bf16.msra.mxu3 %v1287_v11  ;;  %v555_v38 = vpop.permute.xlu2 %554  ;;  %v541_v42 = vadd.f32 %v525_v20, %v444_v31 }
  0xbf   : > { %1105 = vmatpush.bf16.msra.mxu1 %v1287_v11  ;;  %v615_v31 = vmul.f32 %v1786_v15, %v555_v38 }
  0xc0   : > { %v638_v22 = vadd.f32 %v622_v39, %v541_v42 }
  0xc3   : > { %v490_v12 = vpop.permute.xlu1 %489 }
  0xc4   : > { %v648_v14 = vpop.permute.xlu0 %647  ;;  %v526_v44 = vmul.f32 %v1629_v34, %v490_v12 }
  0xc5   : > { %1427 = vset.pattern.permute.xlu1 %v1450_v19  ;;  %v711_v62 = vmul.f32 %v1798_v41, %v648_v14 }
  0xc6   : > { %1428 = vset.pattern.permute.xlu2 %v1450_v19  ;;  %703 = vperm.xlu1 %1427, %v1549_v13   ;;  %v1806_v13 = vld [vmem:[%s2114_s2] ss:$0 sm:$0xff]  ;;  %v542_v37 = vadd.f32 %v526_v44, %v445_v43 }
  0xc7   : > { %707 = vperm.xlu2 %1428, %v1561_v16   ;;  %v1811_v16 = vld [vmem:[%s2116_s4] ss:$0 sm:$0xff]  ;;  %v1829_v27 = vpop.permute.xlu2 %493 }
  0xcc   : > { %v680_v45 = vpop.permute.xlu1 %679 }
  0xcd   : > { %v719_v32 = vmul.f32 %v1798_v41, %v680_v45 }
  0xce   : > { %v587_v36 = vpop.permute.xlu0 %586  ;;  %1429 = vset.pattern.permute.xlu1 %v1448_v17  ;;  %v720_v17 = vmul.f32 %v1798_v41, %v684_v10  ;;  %v437_v10 = vmul.f32 %v1626_v33, %v1609_v28 }
  0xcf   : > { %v735_v24 = vadd.f32 %v719_v32, %v638_v22  ;;  %v623_v48 = vmul.f32 %v1786_v15, %v587_v36  ;;  %1430 = vset.pattern.permute.xlu2 %v1449_v18  ;;  %481 = vperm.xlu1 %1429, %v1538_v8   ;;  %v1836_v18 = vld [vmem:[%s2118_s6] ss:$0 sm:$0xff] }
  0xd0   : > { %574 = vperm.xlu2 %1430, %v1541_v9   ;;  %v591_v42 = vpop.permute.xlu2 %590  ;;  %v534_v43 = vadd.f32 %v518_v21, %v437_v10  ;;  %v446_v21 = vmul.f32 %v1626_v33, %v1634_v35 }
  0xd1   : > { %vm755_vm0 = vcmp.gt.f32.partialorder %v735_v24, %v1806_v13  ;;  %vm807_vm1 = vcmp.gt.f32.partialorder %v735_v24, %v1811_v16  ;;  %v639_v54 = vadd.f32 %v623_v48, %v542_v37 }
  0xd2   : > { %v1256_v4 = vsel %vm755_vm0, 1.0, %v1451_v25  ;;  %v1272_v58 = vsel %vm807_vm1, 1.0, %v1451_v25 }
  0xd3   : > { %v859_v3 = vmul.f32 %v1818_v46, %v1256_v4  ;;  %v736_v55 = vadd.f32 %v720_v17, %v639_v54  ;;  %v899_v7 = vmul.f32 %v1843_v56, %v1272_v58 }
  0xd5   : > { %vm756_vm2 = vcmp.gt.f32.partialorder %v736_v55, %v1806_v13  ;;  %vm808_vm3 = vcmp.gt.f32.partialorder %v736_v55, %v1811_v16  ;;  %v551_v60 = vpop.permute.xlu1 %550  ;;  %v879_v61 = vsub.f32 %v859_v3, %v1836_v18 }
  0xd6   : > { %v1257_v63 = vsel %vm756_vm2, 1.0, %v1451_v25  ;;  %v614_v0 = vmul.f32 %v1786_v15, %v551_v60  ;;  %v1273_v5 = vsel %vm808_vm3, 1.0, %v1451_v25  ;;  %v595_v17 = vpop.permute.xlu0 %594 }
  0xd7   : > { %1431 = vset.pattern.permute.xlu1 %v1450_v19  ;;  %v860_v6 = vmul.f32 %v1818_v46, %v1257_v63  ;;  %v900_v14 = vmul.f32 %v1843_v56, %v1273_v5  ;;  %v915_v20 = vsub.f32 %v879_v61, %v899_v7  ;;  %v625_v61 = vmul.f32 %v1786_v15, %v595_v17 }
  0xd8   : > { %v630_v11 = vadd.f32 %v614_v0, %v533_v59  ;;  %671 = vperm.xlu1 %1431, %v1541_v9   ;;  %1432 = vset.pattern.permute.xlu2 %v1450_v19  ;;  %v631_v19 = vadd.f32 %v615_v31, %v534_v43  ;;  %v447_v59 = vmul.f32 %v1626_v33, %v1593_v23 }
  0xd9   : > { %v880_v12 = vsub.f32 %v860_v6, %v1836_v18  ;;  %675 = vperm.xlu2 %1432, %v1538_v8   ;;  %v931_v9 = vand.u32 2147483647, %v915_v20  ;;  %v692_v37 = vpop.permute.xlu2 %691  ;;  %v527_v5 = vmul.f32 %v1629_v34, %v1829_v27 }
  0xda   : > { %v727_v39 = vadd.f32 %v711_v62, %v630_v11  ;;  %v722_v63 = vmul.f32 %v1798_v41, %v692_v37  ;;  %v624_v11 = vmul.f32 %v1786_v15, %v591_v42 }
  0xdb   : > { %v916_v28 = vsub.f32 %v880_v12, %v900_v14  ;;  %v543_v31 = vadd.f32 %v527_v5, %v446_v21 }
  0xdc   : > { %vm747_vm4 = vcmp.gt.f32.partialorder %v727_v39, %v1806_v13  ;;  %vm799_vm5 = vcmp.gt.f32.partialorder %v727_v39, %v1811_v16 }
  0xdd   : > { %v1248_v30 = vsel %vm747_vm4, 1.0, %v1451_v25  ;;  %v932_v44 = vand.u32 2147483647, %v916_v28  ;;  %v1264_v36 = vsel %vm799_vm5, 1.0, %v1451_v25  ;;  %v640_v28 = vadd.f32 %v624_v11, %v543_v31 }
  0xde   : > { %v652_v45 = vpop.permute.xlu1 %651  ;;  %v851_v8 = vmul.f32 %v1818_v46, %v1248_v30  ;;  %v891_v54 = vmul.f32 %v1843_v56, %v1264_v36 }
  0xdf   : > { %v712_v22 = vmul.f32 %v1798_v41, %v652_v45  ;;  %v943_v32 = vpack.c.bf16 %v932_v44, %v931_v9  ;;  %v603_v14 = vpop.permute.xlu0 %602 }
  0xe0   : > { %v871_v24 = vsub.f32 %v851_v8, %v1836_v18 }
  0xe1   : > { %v728_v38 = vadd.f32 %v712_v22, %v631_v19  ;;  %1077 = vmatmul.bf16.vlgmr.msra.gmra.mxu2 %v943_v32  ;;  %1126 = vmatmul.bf16.vlgmr.msra.gmra.mxu3 %v943_v32 }
  0xe2   : > { %v907_v58 = vsub.f32 %v871_v24, %v891_v54  ;;  %v563_v23 = vpop.permute.xlu2 %562 }
  0xe3   : > { %vm748_vm6 = vcmp.gt.f32.partialorder %v728_v38, %v1806_v13  ;;  %vm800_vm7 = vcmp.gt.f32.partialorder %v728_v38, %v1811_v16 }
  0xe4   : > { %v1249_v48 = vsel %vm748_vm6, 1.0, %v1451_v25  ;;  %v1265_v50 = vsel %vm800_vm7, 1.0, %v1451_v25  ;;  %v923_v6 = vand.u32 2147483647, %v907_v58 }
  0xe5   : > { %v852_v51 = vmul.f32 %v1818_v46, %v1249_v48  ;;  %v892_v55 = vmul.f32 %v1843_v56, %v1265_v50 }
  0xe7   : > { %v498_v4 = vpop.permute.xlu1 %497  ;;  %v872_v3 = vsub.f32 %v852_v51, %v1836_v18 }
  0xe8   : > { %v528_v60 = vmul.f32 %v1629_v34, %v498_v4 }
  0xe9   : > { %v908_v62 = vsub.f32 %v872_v3, %v892_v55  ;;  %v656_v32 = vpop.permute.xlu0 %655  ;;  %v617_v55 = vmul.f32 %v1786_v15, %v563_v23 }
  0xea   : > { %v544_v0 = vadd.f32 %v528_v60, %v447_v59  ;;  %v713_v50 = vmul.f32 %v1798_v41, %v656_v32 }
  0xeb   : > { %v924_v7 = vand.u32 2147483647, %v908_v62  ;;  %v502_v45 = vpop.permute.xlu2 %501  ;;  %v633_v62 = vadd.f32 %v617_v55, %v1748_v52 }
  0xec   : > { %v641_v10 = vadd.f32 %v625_v61, %v544_v0 }
  0xed   : > { %v939_v12 = vpack.c.bf16 %v924_v7, %v923_v6 }
  0xee   : > { %v738_v20 = vadd.f32 %v722_v63, %v641_v10 }
  0xef   : > { %1057 = vmatmul.bf16.vlgmr.msra.gmra.mxu0 %v939_v12  ;;  %1106 = vmatmul.bf16.vlgmr.msra.gmra.mxu1 %v939_v12 }
  0xf0   : > { %vm758_vm8 = vcmp.gt.f32.partialorder %v738_v20, %v1806_v13  ;;  %v688_v39 = vpop.permute.xlu1 %687  ;;  %vm810_vm9 = vcmp.gt.f32.partialorder %v738_v20, %v1811_v16 }
  0xf1   : > { %v1259_v27 = vsel %vm758_vm8, 1.0, %v1451_v25  ;;  %v721_v43 = vmul.f32 %v1798_v41, %v688_v39  ;;  %v1275_v30 = vsel %vm810_vm9, 1.0, %v1451_v25  ;;  %v449_v39 = vmul.f32 %v1626_v33, %v1658_v47 }
  0xf2   : > { %v862_v35 = vmul.f32 %v1818_v46, %v1259_v27  ;;  %v902_v8 = vmul.f32 %v1843_v56, %v1275_v30  ;;  %v529_v30 = vmul.f32 %v1629_v34, %v502_v45 }
  0xf3   : > { %v737_v42 = vadd.f32 %v721_v43, %v640_v28  ;;  %v627_v28 = vmul.f32 %v1786_v15, %v603_v14 }
  0xf4   : > { %v882_v9 = vsub.f32 %v862_v35, %v1836_v18  ;;  %v599_v59 = vpop.permute.xlu2 %598 }
  0xf5   : > { %vm757_vm10 = vcmp.gt.f32.partialorder %v737_v42, %v1806_v13  ;;  %vm809_vm11 = vcmp.gt.f32.partialorder %v737_v42, %v1811_v16  ;;  %v626_v32 = vmul.f32 %v1786_v15, %v599_v59 }
  0xf6   : > { %v1258_v44 = vsel %vm757_vm10, 1.0, %v1451_v25  ;;  %v1274_v19 = vsel %vm809_vm11, 1.0, %v1451_v25  ;;  %v918_v24 = vsub.f32 %v882_v9, %v902_v8 }
  0xf7   : > { %v861_v22 = vmul.f32 %v1818_v46, %v1258_v44  ;;  %v901_v37 = vmul.f32 %v1843_v56, %v1274_v19 }
  0xf8   : > { %v934_v4 = vand.u32 2147483647, %v918_v24 }
  0xf9   : > { %v559_v38 = vpop.permute.xlu1 %558  ;;  %v881_v36 = vsub.f32 %v861_v22, %v1836_v18  ;;  %v448_v22 = vmul.f32 %v1626_v33, %v1662_v49 }
  0xfa   : > { %v616_v48 = vmul.f32 %v1786_v15, %v559_v38 }
  0xfb   : > { %v917_v51 = vsub.f32 %v881_v36, %v901_v37  ;;  %v545_v38 = vadd.f32 %v529_v30, %v448_v22 }
  0xfc   : > { %v632_v17 = vadd.f32 %v616_v48, %v1750_v53 }
  0xfd   : > { %v933_v54 = vand.u32 2147483647, %v917_v51  ;;  %v700_v52 = vpop.permute.xlu2 %699  ;;  %v642_v37 = vadd.f32 %v626_v32, %v545_v38 }
  0xfe   : > { %v729_v3 = vadd.f32 %v713_v50, %v632_v17  ;;  %v724_v35 = vmul.f32 %v1798_v41, %v700_v52 }
  0xff   : > { %v944_v58 = vpack.c.bf16 %v934_v4, %v933_v54 }
 0x100   : > { %vm749_vm12 = vcmp.gt.f32.partialorder %v729_v3, %v1806_v13  ;;  %vm801_vm13 = vcmp.gt.f32.partialorder %v729_v3, %v1811_v16  ;;  %v664_v3 = vpop.permute.xlu0 %663 }
 0x101   : > { %v1250_v60 = vsel %vm749_vm12, 1.0, %v1451_v25  ;;  %1082 = vmatmul.bf16.gmra.mxu2 %v944_v58  ;;  %1131 = vmatmul.bf16.gmra.mxu3 %v944_v58  ;;  %v1266_v5 = vsel %vm801_vm13, 1.0, %v1451_v25 }
 0x102   : > { %v660_v61 = vpop.permute.xlu1 %659  ;;  %v853_v53 = vmul.f32 %v1818_v46, %v1250_v60  ;;  %v893_v11 = vmul.f32 %v1843_v56, %v1266_v5 }
 0x103   : > { %v714_v63 = vmul.f32 %v1798_v41, %v660_v61 }
 0x104   : > { %v873_v6 = vsub.f32 %v853_v53, %v1836_v18 }
 0x105   : > { %v730_v0 = vadd.f32 %v714_v63, %v633_v62  ;;  %v715_v63 = vmul.f32 %v1798_v41, %v664_v3 }
 0x106   : > { %v909_v31 = vsub.f32 %v873_v6, %v893_v11  ;;  %v571_v14 = vpop.permute.xlu2 %570 }
 0x107   : > { %vm750_vm14 = vcmp.gt.f32.partialorder %v730_v0, %v1806_v13  ;;  %vm802_vm15 = vcmp.gt.f32.partialorder %v730_v0, %v1811_v16  ;;  %v619_v52 = vmul.f32 %v1786_v15, %v571_v14 }
 0x108   : > { %v1251_v7 = vsel %vm750_vm14, 1.0, %v1451_v25  ;;  %v1267_v10 = vsel %vm802_vm15, 1.0, %v1451_v25  ;;  %v925_v9 = vand.u32 2147483647, %v909_v31 }
 0x109   : > { %v854_v21 = vmul.f32 %v1818_v46, %v1251_v7  ;;  %v894_v20 = vmul.f32 %v1843_v56, %v1267_v10 }
 0x10b   : > { %v506_v23 = vpop.permute.xlu1 %505  ;;  %v874_v12 = vsub.f32 %v854_v21, %v1836_v18 }
 0x10c   : > { %v530_v27 = vmul.f32 %v1629_v34, %v506_v23 }
 0x10d   : > { %v910_v43 = vsub.f32 %v874_v12, %v894_v20  ;;  %v635_v12 = vadd.f32 %v619_v52, %v1782_v1 }
 0x10e   : > { %v546_v42 = vadd.f32 %v530_v27, %v449_v39 }
 0x10f   : > { %v926_v44 = vand.u32 2147483647, %v910_v43  ;;  %v510_v58 = vpop.permute.xlu2 %509 }
 0x110   : > { %v643_v19 = vadd.f32 %v627_v28, %v546_v42  ;;  %v611_v42 = vpop.permute.xlu0 %610 }
 0x111   : > { %v940_v8 = vpack.c.bf16 %v926_v44, %v925_v9  ;;  %v629_v38 = vmul.f32 %v1786_v15, %v611_v42 }
 0x112   : > { %v740_v47 = vadd.f32 %v724_v35, %v643_v19 }
 0x113   : > { %1062 = vmatmul.bf16.gmra.mxu0 %v940_v8  ;;  %1111 = vmatmul.bf16.gmra.mxu1 %v940_v8  ;;  %v451_v8 = vmul.f32 %v1626_v33, %v1693_v2 }
 0x114   : > { %vm760_vm0 = vcmp.gt.f32.partialorder %v740_v47, %v1806_v13  ;;  %v696_v36 = vpop.permute.xlu1 %695  ;;  %vm812_vm1 = vcmp.gt.f32.partialorder %v740_v47, %v1811_v16 }
 0x115   : > { %v723_v45 = vmul.f32 %v1798_v41, %v696_v36  ;;  %v1261_v24 = vsel %vm760_vm0, 1.0, %v1451_v25  ;;  %v1277_v50 = vsel %vm812_vm1, 1.0, %v1451_v25  ;;  %vm1148_vm0 = vcmask 261120  }
 0x116   : > { %v864_v49 = vmul.f32 %v1818_v46, %v1261_v24  ;;  %v904_v55 = vmul.f32 %v1843_v56, %v1277_v50  ;;  %v450_v50 = vmul.f32 %v1626_v33, %v1604_v26 }
 0x117   : > { %v739_v48 = vadd.f32 %v723_v45, %v642_v37  ;;  %v531_v45 = vmul.f32 %v1629_v34, %v510_v58 }
 0x118   : > { %v884_v51 = vsub.f32 %v864_v49, %v1836_v18  ;;  %v607_v20 = vpop.permute.xlu2 %606 }
 0x119   : > { %vm759_vm2 = vcmp.gt.f32.partialorder %v739_v48, %v1806_v13  ;;  %vm811_vm3 = vcmp.gt.f32.partialorder %v739_v48, %v1811_v16 }
 0x11a   : > { %v1260_v17 = vsel %vm759_vm2, 1.0, %v1451_v25  ;;  %v1276_v54 = vsel %vm811_vm3, 1.0, %v1451_v25  ;;  %v920_v62 = vsub.f32 %v884_v51, %v904_v55  ;;  %v628_v51 = vmul.f32 %v1786_v15, %v607_v20 }
 0x11b   : > { %v863_v4 = vmul.f32 %v1818_v46, %v1260_v17  ;;  %v903_v61 = vmul.f32 %v1843_v56, %v1276_v54  ;;  %v547_v54 = vadd.f32 %v531_v45, %v450_v50 }
 0x11c   : > { %v936_v7 = vand.u32 2147483647, %v920_v62 }
 0x11d   : > { %v567_v59 = vpop.permute.xlu1 %566  ;;  %v883_v60 = vsub.f32 %v863_v4, %v1836_v18  ;;  %v644_v3 = vadd.f32 %v628_v51, %v547_v54 }
 0x11e   : > { %v618_v53 = vmul.f32 %v1786_v15, %v567_v59 }
 0x11f   : > { %v919_v0 = vsub.f32 %v883_v60, %v903_v61 }
 0x120   : > { %v634_v5 = vadd.f32 %v618_v53, %v1642_v40 }
 0x121   : > { %v935_v6 = vand.u32 2147483647, %v919_v0  ;;  %v708_v9 = vpop.permute.xlu2 %707 }
 0x122   : > { %v731_v10 = vadd.f32 %v715_v63, %v634_v5  ;;  %v726_v36 = vmul.f32 %v1798_v41, %v708_v9 }
 0x123   : > { %v945_v21 = vpack.c.bf16 %v936_v7, %v935_v6  ;;  %v579_v6 = vpop.permute.xlu0 %578 }
 0x124   : > { %vm751_vm4 = vcmp.gt.f32.partialorder %v731_v10, %v1806_v13  ;;  %vm803_vm5 = vcmp.gt.f32.partialorder %v731_v10, %v1811_v16 }
 0x125   : > { %v1252_v11 = vsel %vm751_vm4, 1.0, %v1451_v25  ;;  %1087 = vmatmul.bf16.gmra.mxu2 %v945_v21  ;;  %1136 = vmatmul.bf16.gmra.mxu3 %v945_v21  ;;  %v1268_v28 = vsel %vm803_vm5, 1.0, %v1451_v25 }
 0x126   : > { %v668_v23 = vpop.permute.xlu1 %667  ;;  %v855_v40 = vmul.f32 %v1818_v46, %v1252_v11  ;;  %v895_v30 = vmul.f32 %v1843_v56, %v1268_v28 }
 0x127   : > { %v716_v31 = vmul.f32 %v1798_v41, %v668_v23  ;;  %v443_v23 = vmul.f32 %v1626_v33, %v1615_v29 }
 0x128   : > { %v875_v27 = vsub.f32 %v855_v40, %v1836_v18  ;;  %v621_v40 = vmul.f32 %v1786_v15, %v579_v6 }
 0x129   : > { %v732_v39 = vadd.f32 %v716_v31, %v635_v12 }
 0x12a   : > { %v911_v32 = vsub.f32 %v875_v27, %v895_v30  ;;  %v575_v55 = vpop.permute.xlu2 %574 }
 0x12b   : > { %vm752_vm6 = vcmp.gt.f32.partialorder %v732_v39, %v1806_v13  ;;  %vm804_vm7 = vcmp.gt.f32.partialorder %v732_v39, %v1811_v16 }
 0x12c   : > { %v1253_v43 = vsel %vm752_vm6, 1.0, %v1451_v25  ;;  %v1269_v1 = vsel %vm804_vm7, 1.0, %v1451_v25  ;;  %v927_v24 = vand.u32 2147483647, %v911_v32 }
 0x12d   : > { %v856_v35 = vmul.f32 %v1818_v46, %v1253_v43  ;;  %v896_v22 = vmul.f32 %v1843_v56, %v1269_v1  ;;  %v620_v1 = vmul.f32 %v1786_v15, %v575_v55 }
 0x12f   : > { %v514_v44 = vpop.permute.xlu1 %513  ;;  %v876_v19 = vsub.f32 %v856_v35, %v1836_v18  ;;  %v636_v33 = vadd.f32 %v620_v1, %v1678_v57 }
 0x130   : > { %v532_v47 = vmul.f32 %v1629_v34, %v514_v44 }
 0x131   : > { %v912_v14 = vsub.f32 %v876_v19, %v896_v22 }
 0x132   : > { %v548_v37 = vadd.f32 %v532_v47, %v451_v8 }
 0x133   : > { %v928_v49 = vand.u32 2147483647, %v912_v14  ;;  %v676_v10 = vpop.permute.xlu2 %675 }
 0x134   : > { %v645_v48 = vadd.f32 %v629_v38, %v548_v37  ;;  %v718_v39 = vmul.f32 %v1798_v41, %v676_v10  ;;  %v963_v37 = vld [vmem:[%s2120_s8] sm:$0x3] }
 0x135   : > { %v941_v17 = vpack.c.bf16 %v928_v49, %v927_v24 }
 0x136   : > { %v742_v2 = vadd.f32 %v726_v36, %v645_v48 }
 0x137   : > { %1067 = vmatmul.bf16.gmra.mxu0 %v941_v17  ;;  %1116 = vmatmul.bf16.gmra.mxu1 %v941_v17 }
 0x138   : > { %vm762_vm8 = vcmp.gt.f32.partialorder %v742_v2, %v1806_v13  ;;  %v704_v4 = vpop.permute.xlu1 %703  ;;  %vm814_vm9 = vcmp.gt.f32.partialorder %v742_v2, %v1811_v16 }
 0x139   : > { %v1263_v58 = vsel %vm762_vm8, 1.0, %v1451_v25  ;;  %v725_v59 = vmul.f32 %v1798_v41, %v704_v4  ;;  %v1279_v61 = vsel %vm814_vm9, 1.0, %v1451_v25 }
 0x13a   : > { %v866_v26 = vmul.f32 %v1818_v46, %v1263_v58  ;;  %v906_v5 = vmul.f32 %v1843_v56, %v1279_v61 }
 0x13b   : > { %v741_v60 = vadd.f32 %v725_v59, %v644_v3 }
 0x13c   : > { %v886_v62 = vsub.f32 %v866_v26, %v1836_v18 }
 0x13d   : > { %vm761_vm10 = vcmp.gt.f32.partialorder %v741_v60, %v1806_v13  ;;  %vm813_vm11 = vcmp.gt.f32.partialorder %v741_v60, %v1811_v16 }
 0x13e   : > { %v1262_v53 = vsel %vm761_vm10, 1.0, %v1451_v25  ;;  %v1278_v63 = vsel %vm813_vm11, 1.0, %v1451_v25  ;;  %v922_v11 = vsub.f32 %v886_v62, %v906_v5 }
 0x13f   : > { %v865_v0 = vmul.f32 %v1818_v46, %v1262_v53  ;;  %v905_v21 = vmul.f32 %v1843_v56, %v1278_v63 }
 0x140   : > { %v938_v27 = vand.u32 2147483647, %v922_v11 }
 0x141   : > { %v482_v7 = vpop.permute.xlu1 %481  ;;  %v885_v52 = vsub.f32 %v865_v0, %v1836_v18 }
 0x142   : > { %v524_v12 = vmul.f32 %v1629_v34, %v482_v7 }
 0x143   : > { %v921_v20 = vsub.f32 %v885_v52, %v905_v21 }
 0x144   : > { %v540_v31 = vadd.f32 %v524_v12, %v443_v23 }
 0x145   : > { %v937_v28 = vand.u32 2147483647, %v921_v20 }
 0x146   : > { %v637_v43 = vadd.f32 %v621_v40, %v540_v31 }
 0x147   : > { %v946_v35 = vpack.c.bf16 %v938_v27, %v937_v28 }
 0x148   : > { %v734_v42 = vadd.f32 %v718_v39, %v637_v43 }
 0x149   : > { %1092 = vmatmul.bf16.gmra.mxu2 %v946_v35  ;;  %1141 = vmatmul.bf16.gmra.mxu3 %v946_v35 }
 0x14a   : > { %vm754_vm12 = vcmp.gt.f32.partialorder %v734_v42, %v1806_v13  ;;  %v672_v29 = vpop.permute.xlu1 %671  ;;  %vm806_vm13 = vcmp.gt.f32.partialorder %v734_v42, %v1811_v16 }
 0x14b   : > { %v1255_v34 = vsel %vm754_vm12, 1.0, %v1451_v25  ;;  %v717_v30 = vmul.f32 %v1798_v41, %v672_v29  ;;  %v1271_v15 = vsel %vm806_vm13, 1.0, %v1451_v25 }
 0x14c   : > { %v858_v9 = vmul.f32 %v1818_v46, %v1255_v34  ;;  %v898_v41 = vmul.f32 %v1843_v56, %v1271_v15 }
 0x14d   : > { %v733_v44 = vadd.f32 %v717_v30, %v636_v33 }
 0x14e   : > { %v878_v19 = vsub.f32 %v858_v9, %v1836_v18 }
 0x14f   : > { %vm753_vm14 = vcmp.gt.f32.partialorder %v733_v44, %v1806_v13  ;;  %vm805_vm15 = vcmp.gt.f32.partialorder %v733_v44, %v1811_v16 }
 0x150   : > { %v1254_v57 = vsel %vm753_vm14, 1.0, %v1451_v25  ;;  %v1270_v22 = vsel %vm805_vm15, 1.0, %v1451_v25  ;;  %v914_v38 = vsub.f32 %v878_v19, %v898_v41  ;;  %v2020_v25 = vperm.slane %v963_v37, 0 }
 0x151   : > { %v857_v32 = vmul.f32 %v1818_v46, %v1254_v57  ;;  %v897_v47 = vmul.f32 %v1843_v56, %v1270_v22  ;;  %v2022_v46 = vperm.slane %v963_v37, 1 }
 0x152   : > { %v930_v36 = vand.u32 2147483647, %v914_v38 }
 0x153   : > { %v877_v8 = vsub.f32 %v857_v32, %v1836_v18 }
 0x155   : > { %v913_v14 = vsub.f32 %v877_v8, %v897_v47 }
 0x157   : > { %v929_v13 = vand.u32 2147483647, %v913_v14 }
 0x159   : > { %v942_v16 = vpack.c.bf16 %v930_v36, %v929_v13 }
 0x15b   : > { %1072 = vmatmul.bf16.gmra.mxu0 %v942_v16  ;;  %1121 = vmatmul.bf16.gmra.mxu1 %v942_v16 }
 0x164   : > { %v1078_v18 = vpop.f32.mrf.mxu2  ;;  %v1127_v56 = vpop.f32.mrf.mxu3 }
 0x165   : > { %v1079_v45 = vadd.f32 %v1078_v18, %v2020_v25  ;;  %v1128_v24 = vadd.f32 %v1127_v56, %v2022_v46 }
 0x167   : > { %1164 = vst [vmem:[%s2027_s21 + $0x80] sm:$0xff] %v1079_v45 }
 0x168   : > { %1165 = vst.msk [vmem:[%s2027_s21 + $0x88] sm:$0xff] %vm1148_vm0, %v1128_v24 }
 0x16c   : > { %v1080_v49 = vpop.f32.mrf.mxu2  ;;  %v1129_v48 = vpop.f32.mrf.mxu3 }
 0x16d   : > { %v1081_v50 = vadd.f32 %v1080_v49, %v2020_v25  ;;  %v1130_v51 = vadd.f32 %v1129_v48, %v2022_v46  ;;  %v1058_v17 = vpop.f32.mrf.mxu0  ;;  %v1107_v2 = vpop.f32.mrf.mxu1 }
 0x16e   : > { %v1059_v54 = vadd.f32 %v1058_v17, %v2020_v25  ;;  %v1108_v4 = vadd.f32 %v1107_v2, %v2022_v46 }
 0x16f   : > { %1166 = vst [vmem:[%s2027_s21 + $0x90] sm:$0xff] %v1081_v50 }
 0x170   : > { %1167 = vst.msk [vmem:[%s2027_s21 + $0x98] sm:$0xff] %vm1148_vm0, %v1130_v51 }
 0x171   : > { %1147 = vst [vmem:[%s2027_s21] sm:$0xff] %v1059_v54 }
 0x172   : > { %1149 = vst.msk [vmem:[%s2027_s21 + $0x8] sm:$0xff] %vm1148_vm0, %v1108_v4 }
 0x175   : > { %v1060_v3 = vpop.f32.mrf.mxu0  ;;  %v1109_v55 = vpop.f32.mrf.mxu1 }
 0x176   : > { %v1061_v58 = vadd.f32 %v1060_v3, %v2020_v25  ;;  %v1110_v59 = vadd.f32 %v1109_v55, %v2022_v46 }
 0x178   : > { %1150 = vst [vmem:[%s2027_s21 + $0x10] sm:$0xff] %v1061_v58 }
 0x179   : > { %1151 = vst.msk [vmem:[%s2027_s21 + $0x18] sm:$0xff] %vm1148_vm0, %v1110_v59 }
 0x184   : > { %v1083_v26 = vpop.f32.mrf.mxu2  ;;  %v1132_v60 = vpop.f32.mrf.mxu3 }
 0x185   : > { %v1084_v61 = vadd.f32 %v1083_v26, %v2020_v25  ;;  %v1133_v62 = vadd.f32 %v1132_v60, %v2022_v46 }
 0x187   : > { %1168 = vst [vmem:[%s2027_s21 + $0xa0] sm:$0xff] %v1084_v61 }
 0x188   : > { %1169 = vst.msk [vmem:[%s2027_s21 + $0xa8] sm:$0xff] %vm1148_vm0, %v1133_v62 }
 0x18c   : > { %v1085_v53 = vpop.f32.mrf.mxu2  ;;  %v1134_v63 = vpop.f32.mrf.mxu3 }
 0x18d   : > { %v1086_v0 = vadd.f32 %v1085_v53, %v2020_v25  ;;  %v1135_v5 = vadd.f32 %v1134_v63, %v2022_v46 }
 0x18f   : > { %1170 = vst [vmem:[%s2027_s21 + $0xb0] sm:$0xff] %v1086_v0 }
 0x190   : > { %1171 = vst.msk [vmem:[%s2027_s21 + $0xb8] sm:$0xff] %vm1148_vm0, %v1135_v5  ;;  %v1063_v6 = vpop.f32.mrf.mxu0  ;;  %v1112_v7 = vpop.f32.mrf.mxu1 }
 0x191   : > { %v1064_v10 = vadd.f32 %v1063_v6, %v2020_v25  ;;  %v1113_v52 = vadd.f32 %v1112_v7, %v2022_v46 }
 0x193   : > { %1152 = vst [vmem:[%s2027_s21 + $0x20] sm:$0xff] %v1064_v10 }
 0x194   : > { %1153 = vst.msk [vmem:[%s2027_s21 + $0x28] sm:$0xff] %vm1148_vm0, %v1113_v52 }
 0x198   : > { %v1065_v21 = vpop.f32.mrf.mxu0  ;;  %v1114_v11 = vpop.f32.mrf.mxu1 }
 0x199   : > { %v1066_v23 = vadd.f32 %v1065_v21, %v2020_v25  ;;  %v1115_v12 = vadd.f32 %v1114_v11, %v2022_v46 }
 0x19b   : > { %1154 = vst [vmem:[%s2027_s21 + $0x30] sm:$0xff] %v1066_v23 }
 0x19c   : > { %1155 = vst.msk [vmem:[%s2027_s21 + $0x38] sm:$0xff] %vm1148_vm0, %v1115_v12 }
 0x1a8   : > { %v1088_v20 = vpop.f32.mrf.mxu2  ;;  %v1137_v40 = vpop.f32.mrf.mxu3 }
 0x1a9   : > { %v1089_v31 = vadd.f32 %v1088_v20, %v2020_v25  ;;  %v1138_v39 = vadd.f32 %v1137_v40, %v2022_v46 }
 0x1ab   : > { %1172 = vst [vmem:[%s2027_s21 + $0xc0] sm:$0xff] %v1089_v31 }
 0x1ac   : > { %1173 = vst.msk [vmem:[%s2027_s21 + $0xc8] sm:$0xff] %vm1148_vm0, %v1138_v39 }
 0x1b0   : > { %v1090_v28 = vpop.f32.mrf.mxu2  ;;  %v1139_v27 = vpop.f32.mrf.mxu3 }
 0x1b1   : > { %v1091_v43 = vadd.f32 %v1090_v28, %v2020_v25  ;;  %v1140_v1 = vadd.f32 %v1139_v27, %v2022_v46 }
 0x1b3   : > { %1174 = vst [vmem:[%s2027_s21 + $0xd0] sm:$0xff] %v1091_v43 }
 0x1b4   : > { %1175 = vst.msk [vmem:[%s2027_s21 + $0xd8] sm:$0xff] %vm1148_vm0, %v1140_v1  ;;  %v1068_v35 = vpop.f32.mrf.mxu0  ;;  %v1117_v42 = vpop.f32.mrf.mxu1 }
 0x1b5   : > { %v1069_v29 = vadd.f32 %v1068_v35, %v2020_v25  ;;  %v1118_v33 = vadd.f32 %v1117_v42, %v2022_v46 }
 0x1b7   : > { %1156 = vst [vmem:[%s2027_s21 + $0x40] sm:$0xff] %v1069_v29 }
 0x1b8   : > { %1157 = vst.msk [vmem:[%s2027_s21 + $0x48] sm:$0xff] %vm1148_vm0, %v1118_v33 }
 0x1bc   : > { %v1070_v34 = vpop.f32.mrf.mxu0  ;;  %v1119_v30 = vpop.f32.mrf.mxu1 }
 0x1bd   : > { %v1071_v9 = vadd.f32 %v1070_v34, %v2020_v25  ;;  %v1120_v44 = vadd.f32 %v1119_v30, %v2022_v46 }
 0x1bf   : > { %1158 = vst [vmem:[%s2027_s21 + $0x50] sm:$0xff] %v1071_v9 }
 0x1c0   : > { %1159 = vst.msk [vmem:[%s2027_s21 + $0x58] sm:$0xff] %vm1148_vm0, %v1120_v44 }
 0x1cc   : > { %v1093_v15 = vpop.f32.mrf.mxu2  ;;  %v1142_v19 = vpop.f32.mrf.mxu3 }
 0x1cd   : > { %v1094_v57 = vadd.f32 %v1093_v15, %v2020_v25  ;;  %v1143_v22 = vadd.f32 %v1142_v19, %v2022_v46 }
 0x1cf   : > { %1176 = vst [vmem:[%s2027_s21 + $0xe0] sm:$0xff] %v1094_v57 }
 0x1d0   : > { %1177 = vst.msk [vmem:[%s2027_s21 + $0xe8] sm:$0xff] %vm1148_vm0, %v1143_v22 }
 0x1d4   : > { %v1095_v32 = vpop.f32.mrf.mxu2  ;;  %v1144_v41 = vpop.f32.mrf.mxu3 }
 0x1d5   : > { %v1096_v8 = vadd.f32 %v1095_v32, %v2020_v25  ;;  %v1145_v47 = vadd.f32 %v1144_v41, %v2022_v46 }
 0x1d7   : > { %1178 = vst [vmem:[%s2027_s21 + $0xf0] sm:$0xff] %v1096_v8 }
 0x1d8   : > { %1179 = vst.msk [vmem:[%s2027_s21 + $0xf8] sm:$0xff] %vm1148_vm0, %v1145_v47  ;;  %v1073_v38 = vpop.f32.mrf.mxu0  ;;  %v1122_v14 = vpop.f32.mrf.mxu1 }
 0x1d9   : > { %v1074_v13 = vadd.f32 %v1073_v38, %v2020_v25  ;;  %v1123_v36 = vadd.f32 %v1122_v14, %v2022_v46 }
 0x1db   : > { %1160 = vst [vmem:[%s2027_s21 + $0x60] sm:$0xff] %v1074_v13 }
 0x1dc   : > { %1161 = vst.msk [vmem:[%s2027_s21 + $0x68] sm:$0xff] %vm1148_vm0, %v1123_v36 }
 0x1e0   : > { %v1075_v16 = vpop.f32.mrf.mxu0  ;;  %v1124_v37 = vpop.f32.mrf.mxu1 }
 0x1e1   : > { %v1076_v18 = vadd.f32 %v1075_v16, %v2020_v25  ;;  %v1125_v56 = vadd.f32 %v1124_v37, %v2022_v46 }
 0x1e3   : > { %1162 = vst [vmem:[%s2027_s21 + $0x70] sm:$0xff] %v1076_v18 }
 0x1e4   : > { %1163 = vst.msk [vmem:[%s2027_s21 + $0x78] sm:$0xff] %vm1148_vm0, %v1125_v56 }
 0x1e5 PF: > { %s19_s30 = sadd.s32 1, %s1445_s30  }
 0x1e6   : > { %p16_p4 = scmp.ge.s32.totalorder %s19_s30, 4  }
 0x1e8   :  { %18 = sbr.rel (!%p16_p4) target bundleno = 1 (0x1), region = 86 }

</bundles_post_ra>
